<compile_context>
chip_gen: v7x
topology: tpu7x:2x2x1
jax: 0.10.0
libtpu: 0.0.40
codegen_flags: <defaults>
</compile_context>

<pallas_src>
import math
import jax
import jax.numpy as jnp
from jax.experimental import pallas as pl
from jax.experimental.pallas import tpu as pltpu

# ---------------- problem sizes (small, consistent with the module) ----------
B, S, D = 2, 8, 32          # batch, seq, d_model ("size" of the EncoderLayer)
H = 4                       # attention heads
DK = D // H                 # per-head dim
HD = H * DK                 # = D, lane-concatenated head width
DFF = 64                    # feed-forward hidden dim
BS = B * S                  # flattened batch*seq rows
G = H * B                   # (head, batch) pairs, head-major
EPS = 1e-6                  # LayerNorm eps (Annotated Transformer uses 1e-6)
NEG_INF = -1e9

# ---------------- packed-weight-slab layout ([SLAB_ROWS, 128] f32) -----------
#   rows 0:32   cols 0:96   -> Wq|Wk|Wv fused   (Wq pre-scaled by 1/sqrt(DK))
#   rows 0:32   cols 96:128 -> Wo
#   rows 32:64  cols 0:64   -> W1
#   rows 32:96  cols 64:96  -> W2
#   row  96     cols 0:96   -> bq|bk|bv (bq pre-scaled),  cols 96:128 -> bo
#   row  97     cols 0:64   -> b1,                        cols 64:96  -> b2
#   row  98     cols 0:32/32:64/64:96/96:128 -> ln1_g / ln1_b / ln2_g / ln2_b
SLAB_ROWS = 104             # 99 used, padded to a multiple of 8 sublanes
_R_VEC0 = 96
_R_VEC1 = 97
_R_VEC2 = 98


# ---------------- in-kernel helpers -------------------------------------------
def _layernorm(x, gamma, beta):
    # Annotated Transformer LayerNorm: a_2 * (x - mean) / (std + eps) + b_2
    # torch .std() is unbiased (ddof=1).  EXACT reciprocal here (the LN scale
    # multiplies the whole residual stream).
    mean = jnp.mean(x, axis=-1, keepdims=True)
    var = jnp.sum((x - mean) ** 2, axis=-1, keepdims=True) * (1.0 / (x.shape[-1] - 1))
    inv = 1.0 / (jnp.sqrt(var) + EPS)
    return gamma * (x - mean) * inv + beta


def _softmax(scores):
    m = jnp.max(scores, axis=-1, keepdims=True)
    e = jnp.exp(scores - m)
    # approx reciprocal only for the softmax denominator (EUP slot, ~free)
    return e * pl.reciprocal(jnp.sum(e, axis=-1, keepdims=True), approx=True)


# ---------------- kernel -------------------------------------------------------
def encoder_layer_kernel(
    x_ref,       # [BS, D]
    mask_ref,    # [B, S, S]   (1.0 = attend, 0.0 = masked)
    w_ref,       # [SLAB_ROWS, 128]  packed weights/biases/LN vectors
    out_ref,     # [BS, D]
):
    x = x_ref[...]                                           # [BS, D]

    # static slices of the single weight slab (loaded once)
    wqkv = w_ref[0:D, 0:3 * HD]                              # [32, 96]
    wo = w_ref[0:D, 3 * HD:3 * HD + D]                       # [32, 32]
    w1 = w_ref[D:2 * D, 0:DFF]                               # [32, 64]
    w2 = w_ref[D:D + DFF, DFF:DFF + D]                       # [64, 32]
    bqkv = w_ref[_R_VEC0:_R_VEC0 + 1, 0:3 * HD]              # [1, 96]
    bo = w_ref[_R_VEC0:_R_VEC0 + 1, 3 * HD:3 * HD + D]       # [1, 32]
    b1 = w_ref[_R_VEC1:_R_VEC1 + 1, 0:DFF]                   # [1, 64]
    b2 = w_ref[_R_VEC1:_R_VEC1 + 1, DFF:DFF + D]             # [1, 32]
    ln1_g = w_ref[_R_VEC2:_R_VEC2 + 1, 0:D]
    ln1_b = w_ref[_R_VEC2:_R_VEC2 + 1, D:2 * D]
    ln2_g = w_ref[_R_VEC2:_R_VEC2 + 1, 2 * D:3 * D]
    ln2_b = w_ref[_R_VEC2:_R_VEC2 + 1, 3 * D:4 * D]

    # ---- sublayer 0: x + SelfAttn(LayerNorm(x), mask) -----------------------
    xn = _layernorm(x, ln1_g, ln1_b)                         # [BS, D]

    # single fused QKV projection: one dense MXU push (Wq already scaled)
    qkv = jnp.dot(xn, wqkv, preferred_element_type=jnp.float32) + bqkv  # [BS, 3*HD]

    def split_heads(t):  # [BS, H*DK] -> [G=H*B, S, DK]   (small ~6 KB relayout)
        th = jnp.stack([t[:, h * DK:(h + 1) * DK] for h in range(H)], axis=0)
        return th.reshape(G, S, DK)                          # [H,BS,DK]->[G,S,DK]

    q = split_heads(qkv[:, 0:HD])
    k = split_heads(qkv[:, HD:2 * HD])
    v = split_heads(qkv[:, 2 * HD:3 * HD])

    # all (head, batch) scores in one batched matmul
    s = jnp.einsum('gqd,gkd->gqk', q, k,
                   preferred_element_type=jnp.float32)       # [G, S, S]

    # additive mask bias computed once, replicated over heads (leading dim)
    bias = jnp.where(mask_ref[...] > 0.0, 0.0, NEG_INF)      # [B, S, S]
    s = s + jnp.broadcast_to(bias[None], (H, B, S, S)).reshape(G, S, S)

    p = _softmax(s)                                          # [G, S, S]
    pv = jnp.einsum('gqk,gkd->gqd', p, v,
                    preferred_element_type=jnp.float32)      # [G, S, DK]

    # heads back to lanes, then ONE dense output projection against un-split Wo
    pv_h = pv.reshape(H, BS, DK)
    pv2 = jnp.concatenate([pv_h[h] for h in range(H)], axis=-1)   # [BS, HD]
    attn = jnp.dot(pv2, wo, preferred_element_type=jnp.float32) + bo

    x1 = x + attn        # residual (dropout is identity in eval mode)

    # ---- sublayer 1: x + FeedForward(LayerNorm(x)) ---------------------------
    xn2 = _layernorm(x1, ln2_g, ln2_b)
    h1 = jnp.maximum(
        jnp.dot(xn2, w1, preferred_element_type=jnp.float32) + b1, 0.0)
    ff = jnp.dot(h1, w2, preferred_element_type=jnp.float32) + b2

    out_ref[...] = x1 + ff


# ---------------- wrapper ------------------------------------------------------
def pack_params(params):
    """Pack the 18 module-layout params into ONE lane-dense [SLAB_ROWS,128]
    f32 slab.  Call ONCE at init (not per forward call); also folds the
    1/sqrt(dk) attention scale into Wq/bq."""
    (ln1_g, ln1_b, wq, bq, wk, bk, wv, bv, wo, bo,
     ln2_g, ln2_b, w1, b1, w2, b2) = params
    scale = 1.0 / math.sqrt(DK)
    slab = jnp.zeros((SLAB_ROWS, 128), jnp.float32)
    slab = slab.at[0:D, 0:3 * HD].set(jnp.concatenate([wq * scale, wk, wv], axis=1))
    slab = slab.at[0:D, 3 * HD:3 * HD + D].set(wo)
    slab = slab.at[D:2 * D, 0:DFF].set(w1)
    slab = slab.at[D:D + DFF, DFF:DFF + D].set(w2)
    slab = slab.at[_R_VEC0, 0:3 * HD].set(
        jnp.concatenate([bq * scale, bk, bv], axis=1)[0])
    slab = slab.at[_R_VEC0, 3 * HD:3 * HD + D].set(bo[0])
    slab = slab.at[_R_VEC1, 0:DFF].set(b1[0])
    slab = slab.at[_R_VEC1, DFF:DFF + D].set(b2[0])
    slab = slab.at[_R_VEC2, 0:D].set(ln1_g[0])
    slab = slab.at[_R_VEC2, D:2 * D].set(ln1_b[0])
    slab = slab.at[_R_VEC2, 2 * D:3 * D].set(ln2_g[0])
    slab = slab.at[_R_VEC2, 3 * D:4 * D].set(ln2_b[0])
    return slab


@jax.jit
def encoder_layer(x, mask, w_slab):
    """x: [B,S,D] f32, mask: [B,S,S] f32 (1=attend, 0=masked),
    w_slab: [SLAB_ROWS,128] from pack_params (packed once at init)."""
    x2d = x.reshape(BS, D)
    vmem = pl.BlockSpec(memory_space=pltpu.MemorySpace.VMEM)
    out = pl.pallas_call(
        encoder_layer_kernel,
        out_shape=jax.ShapeDtypeStruct((BS, D), jnp.float32),
        in_specs=[vmem, vmem, vmem],
        out_specs=vmem,
    )(x2d, mask, w_slab)
    return out.reshape(B, S, D)


# ---------------- pure-JAX reference (original module math, unpacked params) --
def _layernorm_ref(x, gamma, beta):
    mean = jnp.mean(x, axis=-1, keepdims=True)
    var = jnp.sum((x - mean) ** 2, axis=-1, keepdims=True) / (x.shape[-1] - 1)
    return gamma * (x - mean) / (jnp.sqrt(var) + EPS) + beta


def encoder_layer_ref(x, mask, params):
    (ln1_g, ln1_b, wq, bq, wk, bk, wv, bv, wo, bo,
     ln2_g, ln2_b, w1, b1, w2, b2) = params
    out = []
    for b in range(B):
        xb, mb = x[b], mask[b]
        xn = _layernorm_ref(xb, ln1_g, ln1_b)
        q = xn @ wq + bq
        k = xn @ wk + bk
        v = xn @ wv + bv
        heads = []
        for h in range(H):
            qh = q[:, h * DK:(h + 1) * DK]
            kh = k[:, h * DK:(h + 1) * DK]
            vh = v[:, h * DK:(h + 1) * DK]
            s = (qh @ kh.T) / math.sqrt(DK)
            s = jnp.where(mb > 0.0, s, NEG_INF)
            p = jax.nn.softmax(s, axis=-1)
            heads.append(p @ vh)
        attn = jnp.concatenate(heads, axis=-1) @ wo + bo
        x1 = xb + attn
        xn2 = _layernorm_ref(x1, ln2_g, ln2_b)
        ff = jnp.maximum(xn2 @ w1 + b1, 0.0) @ w2 + b2
        out.append(x1 + ff)
    return jnp.stack(out)


if __name__ == "__main__":
    key = jax.random.PRNGKey(0)
    keys = jax.random.split(key, 16)

    def winit(k, shape, scale=0.05):
        return (scale * jax.random.normal(k, shape)).astype(jnp.float32)

    params = (
        jnp.ones((1, D), jnp.float32),            # ln1 gamma (a_2)
        jnp.zeros((1, D), jnp.float32),           # ln1 beta  (b_2)
        winit(keys[0], (D, D)), winit(keys[1], (1, D)),       # Wq, bq
        winit(keys[2], (D, D)), winit(keys[3], (1, D)),       # Wk, bk
        winit(keys[4], (D, D)), winit(keys[5], (1, D)),       # Wv, bv
        winit(keys[6], (D, D)), winit(keys[7], (1, D)),       # Wo, bo
        jnp.ones((1, D), jnp.float32),            # ln2 gamma
        jnp.zeros((1, D), jnp.float32),           # ln2 beta
        winit(keys[8], (D, DFF)), winit(keys[9], (1, DFF)),   # W1, b1
        winit(keys[10], (DFF, D)), winit(keys[11], (1, D)),   # W2, b2
    )

    # Pack ONCE at init (perf feedback); reused for every forward call.
    w_slab = jax.block_until_ready(pack_params(params))

    x = jax.random.normal(keys[12], (B, S, D), dtype=jnp.float32)
    # padding-style mask: batch 0 attends to all 8 positions, batch 1 to first 6
    lengths = jnp.array([8, 6])
    col = jnp.arange(S)[None, None, :]                          # [1,1,S]
    mask = (col < lengths[:, None, None]).astype(jnp.float32)   # [B,1,S]
    mask = jnp.broadcast_to(mask, (B, S, S))                    # [B,S,S]

    out = encoder_layer(x, mask, w_slab)
    out = jax.block_until_ready(out)

    ref = encoder_layer_ref(x, mask, params)
    assert out.shape == (B, S, D)
    # LayerNorm now uses exact reciprocal; only the softmax denominator uses
    # the EUP approx reciprocal, so errors stay well inside 1e-3.
    assert jnp.allclose(out, ref, atol=1e-3, rtol=1e-3), \
        f"max abs err {jnp.max(jnp.abs(out - ref))}"

    print("KERNEL_OK")
</pallas_src>

<mosaic_0001>
module attributes {stable_mosaic.version = 11 : i64} {
  func.func @encoder_layer_kernel(%arg0: memref<16x32xf32, #tpu.memory_space<vmem>>, %arg1: memref<2x8x8xf32, #tpu.memory_space<vmem>>, %arg2: memref<104x128xf32, #tpu.memory_space<vmem>>, %arg3: memref<16x32xf32, #tpu.memory_space<vmem>>) attributes {dimension_semantics = [], scalar_prefetch = 0 : i64, scratch_operands = 0 : i64, tpu.core_type = #tpu.core_type<tc>} {
    %c0 = arith.constant 0 : index
    %c0_0 = arith.constant 0 : index
    %0 = vector.load %arg0[%c0, %c0_0] : memref<16x32xf32, #tpu.memory_space<vmem>>, vector<16x32xf32>
    %c0_1 = arith.constant 0 : index
    %c0_2 = arith.constant 0 : index
    %1 = vector.load %arg2[%c0_1, %c0_2] : memref<104x128xf32, #tpu.memory_space<vmem>>, vector<32x96xf32>
    %c0_3 = arith.constant 0 : index
    %c96 = arith.constant 96 : index
    %2 = vector.load %arg2[%c0_3, %c96] : memref<104x128xf32, #tpu.memory_space<vmem>>, vector<32x32xf32>
    %c32 = arith.constant 32 : index
    %c0_4 = arith.constant 0 : index
    %3 = vector.load %arg2[%c32, %c0_4] : memref<104x128xf32, #tpu.memory_space<vmem>>, vector<32x64xf32>
    %c32_5 = arith.constant 32 : index
    %c64 = arith.constant 64 : index
    %4 = vector.load %arg2[%c32_5, %c64] : memref<104x128xf32, #tpu.memory_space<vmem>>, vector<64x32xf32>
    %c96_6 = arith.constant 96 : index
    %c0_7 = arith.constant 0 : index
    %5 = vector.load %arg2[%c96_6, %c0_7] : memref<104x128xf32, #tpu.memory_space<vmem>>, vector<1x96xf32>
    %c96_8 = arith.constant 96 : index
    %c96_9 = arith.constant 96 : index
    %6 = vector.load %arg2[%c96_8, %c96_9] : memref<104x128xf32, #tpu.memory_space<vmem>>, vector<1x32xf32>
    %c97 = arith.constant 97 : index
    %c0_10 = arith.constant 0 : index
    %7 = vector.load %arg2[%c97, %c0_10] : memref<104x128xf32, #tpu.memory_space<vmem>>, vector<1x64xf32>
    %c97_11 = arith.constant 97 : index
    %c64_12 = arith.constant 64 : index
    %8 = vector.load %arg2[%c97_11, %c64_12] : memref<104x128xf32, #tpu.memory_space<vmem>>, vector<1x32xf32>
    %c98 = arith.constant 98 : index
    %c0_13 = arith.constant 0 : index
    %9 = vector.load %arg2[%c98, %c0_13] : memref<104x128xf32, #tpu.memory_space<vmem>>, vector<1x32xf32>
    %c98_14 = arith.constant 98 : index
    %c32_15 = arith.constant 32 : index
    %10 = vector.load %arg2[%c98_14, %c32_15] : memref<104x128xf32, #tpu.memory_space<vmem>>, vector<1x32xf32>
    %c98_16 = arith.constant 98 : index
    %c64_17 = arith.constant 64 : index
    %11 = vector.load %arg2[%c98_16, %c64_17] : memref<104x128xf32, #tpu.memory_space<vmem>>, vector<1x32xf32>
    %c98_18 = arith.constant 98 : index
    %c96_19 = arith.constant 96 : index
    %12 = vector.load %arg2[%c98_18, %c96_19] : memref<104x128xf32, #tpu.memory_space<vmem>>, vector<1x32xf32>
    %cst = arith.constant dense<0.000000e+00> : vector<16xf32>
    %13 = vector.multi_reduction <add>, %0, %cst [1] : vector<16x32xf32> to vector<16xf32>
    %14 = vector.shape_cast %13 : vector<16xf32> to vector<16x1xf32>
    %cst_20 = arith.constant 3.200000e+01 : f32
    %15 = vector.broadcast %cst_20 : f32 to vector<16x1xf32>
    %16 = arith.divf %14, %15 : vector<16x1xf32>
    %17 = vector.broadcast %16 : vector<16x1xf32> to vector<16x32xf32>
    %18 = arith.subf %0, %17 : vector<16x32xf32>
    %19 = arith.mulf %18, %18 : vector<16x32xf32>
    %cst_21 = arith.constant dense<0.000000e+00> : vector<16xf32>
    %20 = vector.multi_reduction <add>, %19, %cst_21 [1] : vector<16x32xf32> to vector<16xf32>
    %21 = vector.shape_cast %20 : vector<16xf32> to vector<16x1xf32>
    %cst_22 = arith.constant 0.0322580636 : f32
    %22 = vector.broadcast %cst_22 : f32 to vector<16x1xf32>
    %23 = arith.mulf %21, %22 : vector<16x1xf32>
    %24 = math.sqrt %23 : vector<16x1xf32>
    %cst_23 = arith.constant 9.99999997E-7 : f32
    %25 = vector.broadcast %cst_23 : f32 to vector<16x1xf32>
    %26 = arith.addf %24, %25 : vector<16x1xf32>
    %cst_24 = arith.constant 1.000000e+00 : f32
    %27 = vector.broadcast %cst_24 : f32 to vector<16x1xf32>
    %28 = arith.divf %27, %26 : vector<16x1xf32>
    %29 = vector.broadcast %16 : vector<16x1xf32> to vector<16x32xf32>
    %30 = arith.subf %0, %29 : vector<16x32xf32>
    %31 = vector.broadcast %9 : vector<1x32xf32> to vector<16x32xf32>
    %32 = arith.mulf %31, %30 : vector<16x32xf32>
    %33 = vector.broadcast %28 : vector<16x1xf32> to vector<16x32xf32>
    %34 = arith.mulf %32, %33 : vector<16x32xf32>
    %35 = vector.broadcast %10 : vector<1x32xf32> to vector<16x32xf32>
    %36 = arith.addf %34, %35 : vector<16x32xf32>
    %cst_25 = arith.constant dense<0.000000e+00> : vector<16x96xf32>
    %37 = tpu.matmul %36, %1, %cst_25 {dimension_numbers = #tpu.dot_dimension_numbers<[1], [0], [0], [1], [0, 0, 1, 1], [], []>} : vector<16x32xf32>, vector<32x96xf32>, vector<16x96xf32> -> vector<16x96xf32>
    %38 = vector.broadcast %5 : vector<1x96xf32> to vector<16x96xf32>
    %39 = arith.addf %37, %38 : vector<16x96xf32>
    %40 = vector.extract_strided_slice %39 {offsets = [0, 0], sizes = [16, 32], strides = [1, 1]} : vector<16x96xf32> to vector<16x32xf32>
    %41 = vector.extract_strided_slice %40 {offsets = [0, 0], sizes = [16, 8], strides = [1, 1]} : vector<16x32xf32> to vector<16x8xf32>
    %42 = vector.extract_strided_slice %40 {offsets = [0, 8], sizes = [16, 8], strides = [1, 1]} : vector<16x32xf32> to vector<16x8xf32>
    %43 = vector.extract_strided_slice %40 {offsets = [0, 16], sizes = [16, 8], strides = [1, 1]} : vector<16x32xf32> to vector<16x8xf32>
    %44 = vector.extract_strided_slice %40 {offsets = [0, 24], sizes = [16, 8], strides = [1, 1]} : vector<16x32xf32> to vector<16x8xf32>
    %45 = vector.shape_cast %41 : vector<16x8xf32> to vector<1x16x8xf32>
    %46 = vector.shape_cast %42 : vector<16x8xf32> to vector<1x16x8xf32>
    %47 = vector.shape_cast %43 : vector<16x8xf32> to vector<1x16x8xf32>
    %48 = vector.shape_cast %44 : vector<16x8xf32> to vector<1x16x8xf32>
    %49 = tpu.concatenate %45, %46, %47, %48 in 0 : vector<1x16x8xf32>, vector<1x16x8xf32>, vector<1x16x8xf32>, vector<1x16x8xf32> -> vector<4x16x8xf32>
    %50 = vector.shape_cast %49 : vector<4x16x8xf32> to vector<8x8x8xf32>
    %51 = vector.extract_strided_slice %39 {offsets = [0, 32], sizes = [16, 32], strides = [1, 1]} : vector<16x96xf32> to vector<16x32xf32>
    %52 = vector.extract_strided_slice %51 {offsets = [0, 0], sizes = [16, 8], strides = [1, 1]} : vector<16x32xf32> to vector<16x8xf32>
    %53 = vector.extract_strided_slice %51 {offsets = [0, 8], sizes = [16, 8], strides = [1, 1]} : vector<16x32xf32> to vector<16x8xf32>
    %54 = vector.extract_strided_slice %51 {offsets = [0, 16], sizes = [16, 8], strides = [1, 1]} : vector<16x32xf32> to vector<16x8xf32>
    %55 = vector.extract_strided_slice %51 {offsets = [0, 24], sizes = [16, 8], strides = [1, 1]} : vector<16x32xf32> to vector<16x8xf32>
    %56 = vector.shape_cast %52 : vector<16x8xf32> to vector<1x16x8xf32>
    %57 = vector.shape_cast %53 : vector<16x8xf32> to vector<1x16x8xf32>
    %58 = vector.shape_cast %54 : vector<16x8xf32> to vector<1x16x8xf32>
    %59 = vector.shape_cast %55 : vector<16x8xf32> to vector<1x16x8xf32>
    %60 = tpu.concatenate %56, %57, %58, %59 in 0 : vector<1x16x8xf32>, vector<1x16x8xf32>, vector<1x16x8xf32>, vector<1x16x8xf32> -> vector<4x16x8xf32>
    %61 = vector.shape_cast %60 : vector<4x16x8xf32> to vector<8x8x8xf32>
    %62 = vector.extract_strided_slice %39 {offsets = [0, 64], sizes = [16, 32], strides = [1, 1]} : vector<16x96xf32> to vector<16x32xf32>
    %63 = vector.extract_strided_slice %62 {offsets = [0, 0], sizes = [16, 8], strides = [1, 1]} : vector<16x32xf32> to vector<16x8xf32>
    %64 = vector.extract_strided_slice %62 {offsets = [0, 8], sizes = [16, 8], strides = [1, 1]} : vector<16x32xf32> to vector<16x8xf32>
    %65 = vector.extract_strided_slice %62 {offsets = [0, 16], sizes = [16, 8], strides = [1, 1]} : vector<16x32xf32> to vector<16x8xf32>
    %66 = vector.extract_strided_slice %62 {offsets = [0, 24], sizes = [16, 8], strides = [1, 1]} : vector<16x32xf32> to vector<16x8xf32>
    %67 = vector.shape_cast %63 : vector<16x8xf32> to vector<1x16x8xf32>
    %68 = vector.shape_cast %64 : vector<16x8xf32> to vector<1x16x8xf32>
    %69 = vector.shape_cast %65 : vector<16x8xf32> to vector<1x16x8xf32>
    %70 = vector.shape_cast %66 : vector<16x8xf32> to vector<1x16x8xf32>
    %71 = tpu.concatenate %67, %68, %69, %70 in 0 : vector<1x16x8xf32>, vector<1x16x8xf32>, vector<1x16x8xf32>, vector<1x16x8xf32> -> vector<4x16x8xf32>
    %72 = vector.shape_cast %71 : vector<4x16x8xf32> to vector<8x8x8xf32>
    "tpu.trace_start"() <{level = 10 : i32, message = "gqd,gkd->gqk"}> : () -> ()
    %cst_26 = arith.constant dense<0.000000e+00> : vector<8x8x8xf32>
    %73 = tpu.matmul %50, %61, %cst_26 {dimension_numbers = #tpu.dot_dimension_numbers<[2], [2], [1], [1], [0, 0, 0, 1, 1, 1], [0], [0]>} : vector<8x8x8xf32>, vector<8x8x8xf32>, vector<8x8x8xf32> -> vector<8x8x8xf32>
    "tpu.trace_stop"() : () -> ()
    %c0_27 = arith.constant 0 : index
    %c0_28 = arith.constant 0 : index
    %c0_29 = arith.constant 0 : index
    %74 = vector.load %arg1[%c0_27, %c0_28, %c0_29] : memref<2x8x8xf32, #tpu.memory_space<vmem>>, vector<2x8x8xf32>
    %cst_30 = arith.constant 0.000000e+00 : f32
    %75 = vector.broadcast %cst_30 : f32 to vector<2x8x8xf32>
    %76 = arith.cmpf ogt, %74, %75 : vector<2x8x8xf32>
    %cst_31 = arith.constant 0.000000e+00 : f32
    %cst_32 = arith.constant -1.000000e+09 : f32
    %77 = vector.broadcast %cst_31 : f32 to vector<2x8x8xf32>
    %78 = vector.broadcast %cst_32 : f32 to vector<2x8x8xf32>
    %79 = arith.select %76, %77, %78 : vector<2x8x8xi1>, vector<2x8x8xf32>
    %80 = vector.shape_cast %79 : vector<2x8x8xf32> to vector<1x2x8x8xf32>
    %81 = vector.shape_cast %80 : vector<1x2x8x8xf32> to vector<1x2x8x8xf32>
    %82 = vector.broadcast %81 : vector<1x2x8x8xf32> to vector<4x2x8x8xf32>
    %83 = vector.shape_cast %82 : vector<4x2x8x8xf32> to vector<8x8x8xf32>
    %84 = arith.addf %73, %83 : vector<8x8x8xf32>
    %cst_33 = arith.constant dense<0xFF800000> : vector<8x8xf32>
    %85 = vector.multi_reduction <maximumf>, %84, %cst_33 [2] : vector<8x8x8xf32> to vector<8x8xf32>
    %86 = vector.shape_cast %85 : vector<8x8xf32> to vector<8x8x1xf32>
    %87 = vector.broadcast %86 : vector<8x8x1xf32> to vector<8x8x8xf32>
    %88 = arith.subf %84, %87 : vector<8x8x8xf32>
    %89 = math.exp %88 : vector<8x8x8xf32>
    %cst_34 = arith.constant dense<0.000000e+00> : vector<8x8xf32>
    %90 = vector.multi_reduction <add>, %89, %cst_34 [2] : vector<8x8x8xf32> to vector<8x8xf32>
    %91 = vector.shape_cast %90 : vector<8x8xf32> to vector<8x8x1xf32>
    %92 = tpu.reciprocal %91 {approx = true} : vector<8x8x1xf32> -> vector<8x8x1xf32>
    %93 = vector.broadcast %92 : vector<8x8x1xf32> to vector<8x8x8xf32>
    %94 = arith.mulf %89, %93 : vector<8x8x8xf32>
    "tpu.trace_start"() <{level = 10 : i32, message = "gqk,gkd->gqd"}> : () -> ()
    %cst_35 = arith.constant dense<0.000000e+00> : vector<8x8x8xf32>
    %95 = tpu.matmul %94, %72, %cst_35 {dimension_numbers = #tpu.dot_dimension_numbers<[2], [1], [1], [2], [0, 0, 0, 1, 1, 2], [0], [0]>} : vector<8x8x8xf32>, vector<8x8x8xf32>, vector<8x8x8xf32> -> vector<8x8x8xf32>
    "tpu.trace_stop"() : () -> ()
    %96 = vector.shape_cast %95 : vector<8x8x8xf32> to vector<4x16x8xf32>
    %97 = vector.extract_strided_slice %96 {offsets = [0, 0, 0], sizes = [1, 16, 8], strides = [1, 1, 1]} : vector<4x16x8xf32> to vector<1x16x8xf32>
    %98 = vector.shape_cast %97 : vector<1x16x8xf32> to vector<16x8xf32>
    %99 = vector.extract_strided_slice %96 {offsets = [1, 0, 0], sizes = [1, 16, 8], strides = [1, 1, 1]} : vector<4x16x8xf32> to vector<1x16x8xf32>
    %100 = vector.shape_cast %99 : vector<1x16x8xf32> to vector<16x8xf32>
    %101 = vector.extract_strided_slice %96 {offsets = [2, 0, 0], sizes = [1, 16, 8], strides = [1, 1, 1]} : vector<4x16x8xf32> to vector<1x16x8xf32>
    %102 = vector.shape_cast %101 : vector<1x16x8xf32> to vector<16x8xf32>
    %103 = vector.extract_strided_slice %96 {offsets = [3, 0, 0], sizes = [1, 16, 8], strides = [1, 1, 1]} : vector<4x16x8xf32> to vector<1x16x8xf32>
    %104 = vector.shape_cast %103 : vector<1x16x8xf32> to vector<16x8xf32>
    %105 = tpu.concatenate %98, %100, %102, %104 in 1 : vector<16x8xf32>, vector<16x8xf32>, vector<16x8xf32>, vector<16x8xf32> -> vector<16x32xf32>
    %cst_36 = arith.constant dense<0.000000e+00> : vector<16x32xf32>
    %106 = tpu.matmul %105, %2, %cst_36 {dimension_numbers = #tpu.dot_dimension_numbers<[1], [0], [0], [1], [0, 0, 1, 1], [], []>} : vector<16x32xf32>, vector<32x32xf32>, vector<16x32xf32> -> vector<16x32xf32>
    %107 = vector.broadcast %6 : vector<1x32xf32> to vector<16x32xf32>
    %108 = arith.addf %106, %107 : vector<16x32xf32>
    %109 = arith.addf %0, %108 : vector<16x32xf32>
    %cst_37 = arith.constant dense<0.000000e+00> : vector<16xf32>
    %110 = vector.multi_reduction <add>, %109, %cst_37 [1] : vector<16x32xf32> to vector<16xf32>
    %111 = vector.shape_cast %110 : vector<16xf32> to vector<16x1xf32>
    %cst_38 = arith.constant 3.200000e+01 : f32
    %112 = vector.broadcast %cst_38 : f32 to vector<16x1xf32>
    %113 = arith.divf %111, %112 : vector<16x1xf32>
    %114 = vector.broadcast %113 : vector<16x1xf32> to vector<16x32xf32>
    %115 = arith.subf %109, %114 : vector<16x32xf32>
    %116 = arith.mulf %115, %115 : vector<16x32xf32>
    %cst_39 = arith.constant dense<0.000000e+00> : vector<16xf32>
    %117 = vector.multi_reduction <add>, %116, %cst_39 [1] : vector<16x32xf32> to vector<16xf32>
    %118 = vector.shape_cast %117 : vector<16xf32> to vector<16x1xf32>
    %cst_40 = arith.constant 0.0322580636 : f32
    %119 = vector.broadcast %cst_40 : f32 to vector<16x1xf32>
    %120 = arith.mulf %118, %119 : vector<16x1xf32>
    %121 = math.sqrt %120 : vector<16x1xf32>
    %cst_41 = arith.constant 9.99999997E-7 : f32
    %122 = vector.broadcast %cst_41 : f32 to vector<16x1xf32>
    %123 = arith.addf %121, %122 : vector<16x1xf32>
    %cst_42 = arith.constant 1.000000e+00 : f32
    %124 = vector.broadcast %cst_42 : f32 to vector<16x1xf32>
    %125 = arith.divf %124, %123 : vector<16x1xf32>
    %126 = vector.broadcast %113 : vector<16x1xf32> to vector<16x32xf32>
    %127 = arith.subf %109, %126 : vector<16x32xf32>
    %128 = vector.broadcast %11 : vector<1x32xf32> to vector<16x32xf32>
    %129 = arith.mulf %128, %127 : vector<16x32xf32>
    %130 = vector.broadcast %125 : vector<16x1xf32> to vector<16x32xf32>
    %131 = arith.mulf %129, %130 : vector<16x32xf32>
    %132 = vector.broadcast %12 : vector<1x32xf32> to vector<16x32xf32>
    %133 = arith.addf %131, %132 : vector<16x32xf32>
    %cst_43 = arith.constant dense<0.000000e+00> : vector<16x64xf32>
    %134 = tpu.matmul %133, %3, %cst_43 {dimension_numbers = #tpu.dot_dimension_numbers<[1], [0], [0], [1], [0, 0, 1, 1], [], []>} : vector<16x32xf32>, vector<32x64xf32>, vector<16x64xf32> -> vector<16x64xf32>
    %135 = vector.broadcast %7 : vector<1x64xf32> to vector<16x64xf32>
    %136 = arith.addf %134, %135 : vector<16x64xf32>
    %cst_44 = arith.constant 0.000000e+00 : f32
    %137 = vector.broadcast %cst_44 : f32 to vector<16x64xf32>
    %138 = arith.maximumf %136, %137 : vector<16x64xf32>
    %cst_45 = arith.constant dense<0.000000e+00> : vector<16x32xf32>
    %139 = tpu.matmul %138, %4, %cst_45 {dimension_numbers = #tpu.dot_dimension_numbers<[1], [0], [0], [1], [0, 0, 1, 1], [], []>} : vector<16x64xf32>, vector<64x32xf32>, vector<16x32xf32> -> vector<16x32xf32>
    %140 = vector.broadcast %8 : vector<1x32xf32> to vector<16x32xf32>
    %141 = arith.addf %139, %140 : vector<16x32xf32>
    %142 = arith.addf %109, %141 : vector<16x32xf32>
    %c0_46 = arith.constant 0 : index
    %c0_47 = arith.constant 0 : index
    %143 = vector.load %arg3[%c0_46, %c0_47] : memref<16x32xf32, #tpu.memory_space<vmem>>, vector<16x32xf32>
    tpu.vector_store %arg3[%c0_46, %c0_47], %142 {strides = array<i32>} : memref<16x32xf32, #tpu.memory_space<vmem>>, vector<16x32xf32>,
    return
  }
}

</mosaic_0001>

<bundles_post_ra>
// kernel: encoder_layer.1
= control target key start
LH: loop header
LB: loop body
LE: loop exit
PB: predicated region body
PF: predicated region fallthrough
CT: control target
= control target key end

     0   :  { %8 = vsyncpa [#allocation3], 0  ;;  %s2779_s0 = inlined_call_operand.hbm [shape: f32[16,32], index: 0, kind: input, shape index: {}]   ;;  %s2780_s1 = inlined_call_operand.hbm [shape: f32[2,8,8], index: 1, kind: input, shape index: {}]   ;;  %s2781_s2 = inlined_call_operand.hbm [shape: f32[104,128], index: 2, kind: input, shape index: {}]   ;;  %s2782_s3 = inlined_call_operand.hbm [shape: f32[16,32], index: 3, kind: output, shape index: {}]  }
   0x1   :  { %9 = vsyncpa [#allocation6], 0 }
   0x2   :  { %10 = vsyncpa [#allocation4], 0  ;;  %s2415_s12 = smov [#allocation5]   ;;  %s2416_s14 = smov [#allocation2]  }
   0x3   :  { %s28_s13 = sshll.u32 %s2415_s12, 4  ;;  %s16_s15 = sshll.u32 %s2416_s14, 4  ;;  %s29_s13 = int_to_ptr.vmem [resolvable:$true] %s28_s13  ;;  %s2452_s15 = int_to_ptr.vmem [resolvable:$true] %s16_s15 }
   0x4   :  { %s2321_s18 = scalar_lea.hbm %s2780_s1, 256 }
   0x5   :  { %p2322_p0 = scmp.ne.s32.totalorder %s2780_s1, %s2321_s18  ;;  %p2325_p1 = scmp.lt.u32.totalorder %s2321_s18, %s2780_s1 }
   0x7   :  { %p2327_p2 = pnand %p2325_p1, %p2322_p0 }
   0x9   :  { %2330 = shalt.err (!%p2327_p2)
}
   0xa   :  { %s2331_s23 = scalar_lea.vmem %s29_s13, 256  ;;  %p2336_p4 = scmp.lt.s32.totalorder %s29_s13, %s29_s13 }
   0xb   :  { %p2332_p3 = scmp.ne.s32.totalorder %s29_s13, %s2331_s23  ;;  %p2337_p5 = scmp.lt.s32.totalorder %s2331_s23, %s2331_s23 }
   0xd   :  { %p2338_p6 = por %p2337_p5, %p2336_p4 }
   0xf   :  { %p2339_p7 = pnand %p2338_p6, %p2332_p3 }
  0x11   :  { %2342 = shalt.err (!%p2339_p7)
}
  0x12   :  { %s2417_s24 = smov 128   ;;  %s2418_s25 = smov 8  }
  0x13   :  { %34 = dma.hbm_to_vmem [thread:$0]  %s2780_s1, 256, %s29_s13, [#allocation6], %s2417_s24, %s2417_s24, %s2418_s25  }
  0x14   :  { %s2343_s30 = scalar_lea.hbm %s2779_s0, 256 }
  0x15   :  { %p2344_p8 = scmp.ne.s32.totalorder %s2779_s0, %s2343_s30  ;;  %p2347_p9 = scmp.lt.u32.totalorder %s2343_s30, %s2779_s0 }
  0x17   :  { %p2349_p10 = pnand %p2347_p9, %p2344_p8 }
  0x19   :  { %2352 = shalt.err (!%p2349_p10)
}
  0x1a   :  { %s2353_s8 = scalar_lea.vmem %s2452_s15, 256  ;;  %p2358_p12 = scmp.lt.s32.totalorder %s2452_s15, %s2452_s15 }
  0x1b   :  { %p2354_p11 = scmp.ne.s32.totalorder %s2452_s15, %s2353_s8  ;;  %p2359_p13 = scmp.lt.s32.totalorder %s2353_s8, %s2353_s8 }
  0x1d   :  { %p2360_p0 = por %p2359_p13, %p2358_p12 }
  0x1f   :  { %p2361_p1 = pnand %p2360_p0, %p2354_p11 }
  0x21   :  { %2364 = shalt.err (!%p2361_p1)
}
  0x22   :  { %22 = dma.hbm_to_vmem [thread:$0]  %s2779_s0, 256, %s2452_s15, [#allocation3], %s2417_s24, %s2417_s24, %s2418_s25  }
  0x23   :  { %s2419_s10 = smov [#allocation7]   ;;  %s2365_s14 = scalar_lea.hbm %s2781_s2, 1664 }
  0x24   :  { %s40_s11 = sshll.u32 %s2419_s10, 4  ;;  %p2366_p2 = scmp.ne.s32.totalorder %s2781_s2, %s2365_s14  ;;  %s41_s11 = int_to_ptr.vmem [resolvable:$true] %s40_s11 }
  0x25   :  { %p2369_p3 = scmp.lt.u32.totalorder %s2365_s14, %s2781_s2 }
  0x27   :  { %p2371_p4 = pnand %p2369_p3, %p2366_p2 }
  0x29   :  { %2374 = shalt.err (!%p2371_p4)
}
  0x2a   :  { %s2375_s20 = scalar_lea.vmem %s41_s11, 1664  ;;  %p2380_p6 = scmp.lt.s32.totalorder %s41_s11, %s41_s11 }
  0x2b   :  { %p2376_p5 = scmp.ne.s32.totalorder %s41_s11, %s2375_s20  ;;  %p2381_p7 = scmp.lt.s32.totalorder %s2375_s20, %s2375_s20 }
  0x2d   :  { %p2382_p8 = por %p2381_p7, %p2380_p6 }
  0x2f   :  { %p2383_p9 = pnand %p2382_p8, %p2376_p5 }
  0x31   :  { %2386 = shalt.err (!%p2383_p9)
}
  0x32   :  { %46 = dma.hbm_to_vmem [thread:$0]  %s2781_s2, 1664, %s41_s11, [#allocation6], %s2417_s24, %s2417_s24, %s2418_s25  }
  0x33   :  { %2409 = dma.done.wait [#allocation3], 256  }
  0x34   :  { %2410 = vsyncadd [#allocation3], 4294967040 }
  0x35   :  { %2411 = dma.done.wait [#allocation6], 1920  }
  0x36   :  { %2412 = vsyncadd [#allocation6], 4294965376  ;;  %vm73_vm0 = vcmask 261120   ;;  %v2504_v0 = vld [vmem:[#allocation2] sm:$0xff]  ;;  %v2506_v1 = vld [vmem:[#allocation2 + $0x8] sm:$0xff]  ;;  %s2420_s2 = smov 96  }
  0x37   :  { %v74_v2 = vsel %vm73_vm0, %v2504_v0, 0.0  ;;  %v77_v3 = vsel %vm73_vm0, %v2506_v1, 0.0  ;;  %v2512_v4 = vld [vmem:[#allocation7 + $0x62] ss:$0 sm:$0xff]  ;;  %v2522_v16 = vld [vmem:[#allocation7 + $0x8] sm:$0xff]  ;;  %v2528_v19 = vld [vmem:[#allocation7 + $0x10] sm:$0xff] }
  0x38   :  { %75 = vadd.xlane.f32.xlu0 %v74_v2  ;;  %v2520_v15 = vld [vmem:[#allocation7] sm:$0xff]  ;;  %v2530_v20 = vld [vmem:[#allocation7 + $0x18] sm:$0xff]  ;;  %s2421_s21 = smov 112   ;;  %s2422_s22 = smov 120   ;;  %v2423_v51 = vmov 0.0   ;;  %vm2425_vm5 = vmmov 0  }
  0x39   :  { %v2243_v17 = vpack.i.bf16 %v2522_v16, %v2520_v15  ;;  %v2186_v18 = vpack.c.bf16 %v2522_v16, %v2520_v15  ;;  %v2190_v21 = vpack.c.bf16 %v2530_v20, %v2528_v19  ;;  %v2542_v47 = vld [vmem:[#allocation7 + $0x60] ss:$0 sm:$0xff]  ;;  %2075 = vmatprep.subr.mxu0 %v2423_v51  ;;  %s2424_s23 = smov 104   ;;  %2077 = vmatprep.mubr.msk.f32.mxu0 %vm2425_vm5, %v2423_v51  ;;  %vm236_vm6 = vcmask 64512   ;;  %s2427_s26 = smov 64  }
  0x3a   :  { %s2428_s27 = smov 32   ;;  %s2429_s28 = smov 16   ;;  %vm1565_vm9 = vcmask 130048   ;;  %vm1568_vm10 = vcmask 195584   ;;  %vm1855_vm15 = vcmask 523264  }
  0x3b   :  { %2187 = vmatprep.subr.bf16.mxu1 %v2186_v18  ;;  %s2430_s29 = smov 24   ;;  %s2431_s30 = smov [#allocation8]  }
  0x3c   :  { %78 = vadd.xlane.f32.xlu0 %v77_v3  ;;  %2189 = vmatpush3.bf16.msra.mxu1 %v2186_v18  ;;  %s1946_s4 = sshll.u32 %s2431_s30, 4  ;;  %s1947_s4 = int_to_ptr.vmem [resolvable:$true] %s1946_s4 }
  0x3d   :  { %2191 = vmatprep.subr.bf16.mxu1 %v2190_v21  ;;  %s2387_s5 = scalar_lea.vmem %s1947_s4, 256  ;;  %p2392_p11 = scmp.lt.s32.totalorder %s1947_s4, %s1947_s4 }
  0x3e   :  { %p2388_p10 = scmp.ne.s32.totalorder %s1947_s4, %s2387_s5  ;;  %p2393_p12 = scmp.lt.s32.totalorder %s2387_s5, %s2387_s5 }
  0x40   :  { %2193 = vmatpush3.bf16.msra.mxu1 %v2190_v21  ;;  %p2394_p13 = por %p2393_p12, %p2392_p11 }
  0x41   :  { %2065 = vmatprep.subr.mxu1 %v2423_v51 }
  0x42   :  { %p2395_p0 = pnand %p2394_p13, %p2388_p10 }
  0x52   :  { %124 = vrot.lane.b32.xlu0 %v2512_v4, %s2420_s2 }
  0xc5   :  { %v76_v5 = vpop.xlane.xlu0 %75 }
  0xc6   :  { %v81_v6 = vmul.f32 0.03125, %v76_v5 }
  0xc8   :  { %v83_v7 = vsub.f32 %v2504_v0, %v81_v6  ;;  %v228_v6 = vld [vmem:[#allocation5] sm:$0xff] }
  0xc9   :  { %v79_v8 = vpop.xlane.xlu0 %78  ;;  %vm230_vm7 = vcmp.gt.f32.partialorder %v228_v6, 0.0 }
  0xca   :  { %v82_v9 = vmul.f32 0.03125, %v79_v8  ;;  %v85_v10 = vmul.f32 %v83_v7, %v83_v7  ;;  %v119_v38 = vmul.f32 %v2512_v4, %v83_v7  ;;  %v229_v7 = vld [vmem:[#allocation5 + $0x8] sm:$0xff]  ;;  %v2426_v8 = vmov -1e+09  }
  0xcb   :  { %vm231_vm8 = vcmp.gt.f32.partialorder %v229_v7, 0.0 }
  0xcc   :  { %v84_v11 = vsub.f32 %v2506_v1, %v82_v9  ;;  %v87_v12 = vsel %vm73_vm0, %v85_v10, 0.0  ;;  %v232_v9 = vsel %vm230_vm7, 0.0, %v2426_v8 }
  0xcd   :  { %88 = vadd.xlane.f32.xlu1 %v87_v12  ;;  %v2535_v40 = vpop.permute.xlu0 %124 }
  0xce   :  { %v86_v13 = vmul.f32 %v84_v11, %v84_v11  ;;  %v120_v42 = vmul.f32 %v2512_v4, %v84_v11 }
  0xd0   :  { %v90_v14 = vsel %vm73_vm0, %v86_v13, 0.0  ;;  %v233_v13 = vsel %vm231_vm8, 0.0, %v2426_v8 }
  0xd1   :  { %91 = vadd.xlane.f32.xlu1 %v90_v14 }
 0x15a   :  { %v89_v22 = vpop.xlane.xlu1 %88 }
 0x15b   :  { %v93_v23 = vmul.f32 0.032258064, %v89_v22 }
 0x15d   :  { %2273 = vrsqrt.f32 %v93_v23  ;;  %vm97_vm1 = vcmp.eq.f32.partialorder %v93_v23, inf  ;;  %v100_v28 = vand.u32 2147483648, %v93_v23  ;;  %vm99_vm2 = vcmp.eq.f32.partialorder %v93_v23, 0.0 }
 0x15e   :  { %v92_v24 = vpop.xlane.xlu1 %91 }
 0x15f   :  { %v94_v25 = vmul.f32 0.032258064, %v92_v24 }
 0x161   :  { %2275 = vrsqrt.f32 %v94_v25  ;;  %vm104_vm3 = vcmp.eq.f32.partialorder %v94_v25, inf  ;;  %v107_v34 = vand.u32 2147483648, %v94_v25  ;;  %vm106_vm4 = vcmp.eq.f32.partialorder %v94_v25, 0.0 }
 0x167   :  { %v2274_v26 = vpop.eup %2273 }
 0x168   :  { %v96_v27 = vmul.f32 %v2274_v26, %v93_v23 }
 0x16a   :  { %v98_v29 = vsel %vm97_vm1, %v93_v23, %v96_v27 }
 0x16b   :  { %v2276_v30 = vpop.eup %2275  ;;  %v101_v31 = vsel %vm99_vm2, %v100_v28, %v98_v29 }
 0x16c   :  { %v103_v32 = vmul.f32 %v2276_v30, %v94_v25  ;;  %v109_v33 = vadd.f32 1e-06, %v101_v31 }
 0x16e   :  { %v105_v35 = vsel %vm104_vm3, %v94_v25, %v103_v32  ;;  %2277 = vrcp.f32 %v109_v33 }
 0x16f   :  { %v108_v36 = vsel %vm106_vm4, %v107_v34, %v105_v35 }
 0x170   :  { %v110_v37 = vadd.f32 1e-06, %v108_v36 }
 0x172   :  { %2279 = vrcp.f32 %v110_v37 }
 0x178   :  { %v2278_v39 = vpop.eup %2277 }
 0x179   :  { %v121_v41 = vmul.f32 %v2278_v39, %v119_v38 }
 0x17b   :  { %v127_v43 = vadd.f32 %v2535_v40, %v121_v41 }
 0x17c   :  { %v2280_v44 = vpop.eup %2279 }
 0x17d   :  { %v122_v45 = vmul.f32 %v2280_v44, %v120_v42  ;;  %2062 = vmatprep.mubr.msk.f32.mxu1 %vm73_vm0, %v127_v43 }
 0x17f   :  { %v128_v46 = vadd.f32 %v2535_v40, %v122_v45 }
 0x181   :  { %2063 = vmatmul.mubr.msk.f32.vlgmr.msra.gmra.mrb[0].mxu1 %vm73_vm0, %v128_v46 }
 0x182   :  { %2067 = vmatprep.mubr.msk.f32.mxu1 %vm2425_vm5, %v2423_v51 }
 0x254   :  { %v2064_v48 = vpop.f32.mrb[0].mxu1 }
 0x255   :  { %v2545_v49 = vadd.f32 %v2064_v48, %v2542_v47  ;;  %v205_v50 = vpop.f32.mrb[1].mxu1 }
 0x256   :  { %v2552_v52 = vadd.f32 %v2542_v47, %v205_v50 }
 0x257   :  { %222 = vrot.lane.b32.xlu0 %v2545_v49, %s2421_s21  ;;  %218 = vrot.lane.b32.xlu1 %v2545_v49, %s2422_s22 }
 0x25b   :  { %226 = vrot.lane.b32.xlu0 %v2545_v49, %s2424_s23  ;;  %216 = vrot.lane.b32.xlu1 %v2552_v52, %s2422_s22 }
 0x25f   :  { %311 = vrot.lane.b32.xlu0 %v2545_v49, %s2420_s2  ;;  %220 = vrot.lane.b32.xlu1 %v2552_v52, %s2421_s21 }
 0x263   :  { %224 = vrot.lane.b32.xlu1 %v2552_v52, %s2424_s23 }
 0x267   :  { %234 = vrot.lane.b32.xlu1 %v2552_v52, %s2420_s2 }
 0x2c9   :  { %v2566_v53 = vpop.permute.xlu1 %218  ;;  %v2570_v54 = vpop.permute.xlu0 %222 }
 0x2ca   :  { %463 = vrot.lane.b32.xlu0 %v2566_v53, %s2420_s2 }
 0x2cd   :  { %v2572_v55 = vpop.permute.xlu1 %216  ;;  %v2578_v56 = vpop.permute.xlu0 %226 }
 0x2ce   :  { %615 = vrot.lane.b32.xlu0 %v2570_v54, %s2420_s2  ;;  %387 = vrot.lane.b32.xlu1 %v2572_v55, %s2420_s2 }
 0x2d1   :  { %v2580_v57 = vpop.permute.xlu1 %220  ;;  %v312_v60 = vpop.permute.xlu0 %311 }
 0x2d2   :  { %767 = vrot.lane.b32.xlu0 %v2578_v56, %s2420_s2  ;;  %539 = vrot.lane.b32.xlu1 %v2580_v57, %s2420_s2 }
 0x2d5   :  { %v2586_v58 = vpop.permute.xlu1 %224 }
 0x2d6   :  { %691 = vrot.lane.b32.xlu1 %v2586_v58, %s2420_s2 }
 0x2d9   :  { %v235_v59 = vpop.permute.xlu1 %234 }
 0x2da   :  { %2066 = vmatpush3.xpose.msk.msra.mxu1 %vm236_vm6, %v235_v59 }
 0x2db   :  { %2070 = vmatprep.subr.mxu1 %v2423_v51 }
 0x2dd   :  { %2068 = vmatmul.mubr.msk.f32.vlgmr.msra.gmra.mrb[2].mxu1 %vm236_vm6, %v2552_v52 }
 0x2de   :  { %2071 = vmatpush3.xpose.msk.msra.mxu1 %vm236_vm6, %v312_v60  ;;  %2072 = vmatprep.mubr.msk.f32.mxu1 %vm2425_vm5, %v2423_v51 }
 0x2df   :  { %2080 = vmatprep.subr.mxu1 %v2423_v51 }
 0x2e1   :  { %2073 = vmatmul.mubr.msk.f32.vlgmr.msra.gmra.mrb[4].mxu1 %vm236_vm6, %v2545_v49 }
 0x2e2   :  { %2082 = vmatprep.mubr.msk.f32.mxu1 %vm2425_vm5, %v2423_v51 }
 0x33c   :  { %v464_v61 = vpop.permute.xlu0 %463 }
 0x33d   :  { %2081 = vmatpush3.xpose.msk.msra.mxu1 %vm236_vm6, %v464_v61 }
 0x33e   :  { %2090 = vmatprep.subr.mxu1 %v2423_v51 }
 0x340   :  { %v616_v62 = vpop.permute.xlu0 %615  ;;  %2083 = vmatmul.mubr.msk.f32.vlgmr.msra.gmra.mrb[6].mxu1 %vm236_vm6, %v2566_v53  ;;  %v388_v63 = vpop.permute.xlu1 %387 }
 0x341   :  { %2076 = vmatpush3.xpose.msk.msra.mxu0 %vm236_vm6, %v388_v63  ;;  %2091 = vmatpush3.xpose.msk.msra.mxu1 %vm236_vm6, %v616_v62 }
 0x342   :  { %2092 = vmatprep.mubr.msk.f32.mxu1 %vm2425_vm5, %v2423_v51  ;;  %2085 = vmatprep.subr.mxu0 %v2423_v51 }
 0x343   :  { %2100 = vmatprep.subr.mxu1 %v2423_v51 }
 0x344   :  { %v768_v2 = vpop.permute.xlu0 %767  ;;  %2078 = vmatmul.mubr.msk.f32.vlgmr.msra.gmra.mrb[0].mxu0 %vm236_vm6, %v2572_v55  ;;  %2093 = vmatmul.mubr.msk.f32.vlgmr.msra.gmra.mrb[8].mxu1 %vm236_vm6, %v2570_v54  ;;  %v540_v3 = vpop.permute.xlu1 %539 }
 0x345   :  { %2086 = vmatpush3.xpose.msk.msra.mxu0 %vm236_vm6, %v540_v3  ;;  %2101 = vmatpush3.xpose.msk.msra.mxu1 %vm236_vm6, %v768_v2 }
 0x346   :  { %2087 = vmatprep.mubr.msk.f32.mxu0 %vm2425_vm5, %v2423_v51  ;;  %2102 = vmatprep.mubr.msk.f32.mxu1 %vm2425_vm5, %v2423_v51 }
 0x347   :  { %2095 = vmatprep.subr.mxu0 %v2423_v51  ;;  %2110 = vmatprep.subr.mxu1 %v2423_v51 }
 0x348   :  { %2088 = vmatmul.mubr.msk.f32.vlgmr.msra.gmra.mrb[2].mxu0 %vm236_vm6, %v2580_v57  ;;  %2103 = vmatmul.mubr.msk.f32.vlgmr.msra.gmra.mrb[10].mxu1 %vm236_vm6, %v2578_v56  ;;  %v692_v5 = vpop.permute.xlu1 %691 }
 0x349   :  { %2096 = vmatpush3.xpose.msk.msra.mxu0 %vm236_vm6, %v692_v5  ;;  %2097 = vmatprep.mubr.msk.f32.mxu0 %vm2425_vm5, %v2423_v51 }
 0x34a   :  { %2105 = vmatprep.subr.mxu0 %v2423_v51  ;;  %2112 = vmatprep.mubr.msk.f32.mxu1 %vm2425_vm5, %v2423_v51 }
 0x34c   :  { %2098 = vmatmul.mubr.msk.f32.vlgmr.msra.gmra.mrb[4].mxu0 %vm236_vm6, %v2586_v58 }
 0x34d   :  { %2107 = vmatprep.mubr.msk.f32.mxu0 %vm2425_vm5, %v2423_v51 }
 0x3b0   :  { %v307_v10 = vpop.f32.mrb[2].mxu1 }
 0x3b1   :  { %v308_v11 = vadd.f32 %v307_v10, %v232_v9  ;;  %v2069_v12 = vpop.f32.mrb[3].mxu1 }
 0x3b3   :  { %v843_v14 = vsel %vm236_vm6, %v308_v11, -inf }
 0x3b4   :  { %844 = vmax.xlane.f32.xlu1 %v843_v14  ;;  %v383_v18 = vpop.f32.mrb[4].mxu1 }
 0x3b5   :  { %v384_v21 = vadd.f32 %v383_v18, %v233_v13  ;;  %v2074_v22 = vpop.f32.mrb[5].mxu1 }
 0x3b7   :  { %v846_v23 = vsel %vm236_vm6, %v384_v21, -inf }
 0x3b8   :  { %847 = vmax.xlane.f32.xlu0 %v846_v23 }
 0x413   :  { %v535_v24 = vpop.f32.mrb[6].mxu1 }
 0x414   :  { %v2084_v25 = vpop.f32.mrb[7].mxu1  ;;  %v536_v31 = vadd.f32 %v535_v24, %v233_v13 }
 0x416   :  { %v852_v39 = vsel %vm236_vm6, %v536_v31, -inf }
 0x417   :  { %v459_v26 = vpop.f32.mrb[0].mxu0  ;;  %v687_v27 = vpop.f32.mrb[8].mxu1 }
 0x418   :  { %v460_v28 = vadd.f32 %v459_v26, %v232_v9  ;;  %v2079_v29 = vpop.f32.mrb[1].mxu0  ;;  %v2094_v30 = vpop.f32.mrb[9].mxu1  ;;  %v688_v38 = vadd.f32 %v687_v27, %v233_v13 }
 0x41a   :  { %v849_v32 = vsel %vm236_vm6, %v460_v28, -inf  ;;  %v858_v46 = vsel %vm236_vm6, %v688_v38, -inf }
 0x41b   :  { %v839_v33 = vpop.f32.mrb[10].mxu1  ;;  %850 = vmax.xlane.f32.xlu0 %v849_v32  ;;  %v611_v34 = vpop.f32.mrb[2].mxu0 }
 0x41c   :  { %v612_v35 = vadd.f32 %v611_v34, %v232_v9  ;;  %v2089_v36 = vpop.f32.mrb[3].mxu0  ;;  %v2104_v37 = vpop.f32.mrb[11].mxu1  ;;  %v840_v45 = vadd.f32 %v839_v33, %v233_v13 }
 0x41e   :  { %v855_v41 = vsel %vm236_vm6, %v612_v35, -inf  ;;  %v864_v50 = vsel %vm236_vm6, %v840_v45, -inf }
 0x41f   :  { %853 = vmax.xlane.f32.xlu0 %v852_v39  ;;  %856 = vmax.xlane.f32.xlu1 %v855_v41  ;;  %v763_v42 = vpop.f32.mrb[4].mxu0 }
 0x420   :  { %v764_v43 = vadd.f32 %v763_v42, %v232_v9  ;;  %v2099_v44 = vpop.f32.mrb[5].mxu0 }
 0x422   :  { %v861_v48 = vsel %vm236_vm6, %v764_v43, -inf }
 0x423   :  { %859 = vmax.xlane.f32.xlu0 %v858_v46  ;;  %862 = vmax.xlane.f32.xlu1 %v861_v48 }
 0x427   :  { %865 = vmax.xlane.f32.xlu0 %v864_v50 }
 0x434   :  { %931 = vrot.lane.b32.xlu1 %v2552_v52, %s2427_s26 }
 0x438   :  { %1083 = vrot.lane.b32.xlu1 %v2572_v55, %s2427_s26 }
 0x43c   :  { %1159 = vrot.lane.b32.xlu1 %v2566_v53, %s2427_s26 }
 0x43d   :  { %1007 = vrot.lane.b32.xlu0 %v2545_v49, %s2427_s26 }
 0x440   :  { %1235 = vrot.lane.b32.xlu1 %v2580_v57, %s2427_s26 }
 0x441   :  { %1311 = vrot.lane.b32.xlu0 %v2570_v54, %s2427_s26  ;;  %v845_v61 = vpop.xlane.xlu1 %844 }
 0x442   :  { %v867_v62 = vsub.f32 %v308_v11, %v845_v61 }
 0x444   :  { %v875_v63 = vmul.f32 1.442695, %v867_v62 }
 0x445   :  { %v848_v59 = vpop.xlane.xlu0 %847 }
 0x446   :  { %v868_v60 = vsub.f32 %v384_v21, %v848_v59 }
 0x448   :  { %v877_v52 = vmul.f32 1.442695, %v868_v60 }
 0x44a   :  { %2281 = vpow2.f32 %v877_v52 }
 0x44b   :  { %2283 = vpow2.f32 %v875_v63 }
 0x454   :  { %v2658_v55 = vpop.eup %2281 }
 0x455   :  { %v894_v53 = vsel %vm236_vm6, %v2658_v55, 0.0  ;;  %v2662_v49 = vpop.eup %2283 }
 0x456   :  { %v891_v57 = vsel %vm236_vm6, %v2662_v49, 0.0 }
 0x460   :  { %895 = vadd.xlane.f32.xlu0 %v894_v53  ;;  %v2248_v53 = vpack.i.bf16 %v2530_v20, %v2528_v19 }
 0x464   :  { %892 = vadd.xlane.f32.xlu1 %v891_v57 }
 0x4a8   :  { %v851_v54 = vpop.xlane.xlu0 %850 }
 0x4a9   :  { %v869_v2 = vsub.f32 %v460_v28, %v851_v54 }
 0x4ab   :  { %v879_v3 = vmul.f32 1.442695, %v869_v2 }
 0x4ac   :  { %v854_v5 = vpop.xlane.xlu0 %853  ;;  %v857_v6 = vpop.xlane.xlu1 %856 }
 0x4ad   :  { %2285 = vpow2.f32 %v879_v3  ;;  %v870_v7 = vsub.f32 %v536_v31, %v854_v5  ;;  %v871_v8 = vsub.f32 %v612_v35, %v857_v6 }
 0x4af   :  { %v881_v9 = vmul.f32 1.442695, %v870_v7  ;;  %v883_v10 = vmul.f32 1.442695, %v871_v8 }
 0x4b0   :  { %v860_v11 = vpop.xlane.xlu0 %859  ;;  %v863_v12 = vpop.xlane.xlu1 %862 }
 0x4b1   :  { %2287 = vpow2.f32 %v881_v9  ;;  %v872_v13 = vsub.f32 %v688_v38, %v860_v11  ;;  %v873_v14 = vsub.f32 %v764_v43, %v863_v12 }
 0x4b2   :  { %2289 = vpow2.f32 %v883_v10 }
 0x4b3   :  { %v885_v18 = vmul.f32 1.442695, %v872_v13  ;;  %v887_v21 = vmul.f32 1.442695, %v873_v14 }
 0x4b4   :  { %v866_v22 = vpop.xlane.xlu0 %865  ;;  %v932_v23 = vpop.permute.xlu1 %931 }
 0x4b5   :  { %2291 = vpow2.f32 %v885_v18  ;;  %v874_v24 = vsub.f32 %v840_v45, %v866_v22  ;;  %2106 = vmatpush3.msra.mxu0 %v932_v23 }
 0x4b6   :  { %2293 = vpow2.f32 %v887_v21  ;;  %2115 = vmatprep.subr.mxu0 %v2423_v51 }
 0x4b7   :  { %v2286_v25 = vpop.eup %2285  ;;  %v889_v26 = vmul.f32 1.442695, %v874_v24 }
 0x4b8   :  { %v1008_v27 = vpop.permute.xlu0 %1007  ;;  %v897_v28 = vsel %vm236_vm6, %v2286_v25, 0.0  ;;  %v1084_v39 = vpop.permute.xlu1 %1083 }
 0x4b9   :  { %2295 = vpow2.f32 %v889_v26  ;;  %2111 = vmatpush3.msra.mxu1 %v1008_v27  ;;  %898 = vadd.xlane.f32.xlu1 %v897_v28 }
 0x4ba   :  { %2120 = vmatprep.subr.mxu1 %v2423_v51 }
 0x4bb   :  { %v2288_v29 = vpop.eup %2287 }
 0x4bc   :  { %v2290_v30 = vpop.eup %2289  ;;  %v900_v31 = vsel %vm236_vm6, %v2288_v29, 0.0  ;;  %v1160_v41 = vpop.permute.xlu1 %1159 }
 0x4bd   :  { %901 = vadd.xlane.f32.xlu0 %v900_v31  ;;  %v903_v32 = vsel %vm236_vm6, %v2290_v30, 0.0  ;;  %v1312_v42 = vpop.permute.xlu0 %1311 }
 0x4be   :  { %904 = vadd.xlane.f32.xlu1 %v903_v32 }
 0x4bf   :  { %v2671_v33 = vpop.eup %2291 }
 0x4c0   :  { %v2673_v34 = vpop.eup %2293  ;;  %v906_v35 = vsel %vm236_vm6, %v2671_v33, 0.0  ;;  %v1236_v43 = vpop.permute.xlu1 %1235 }
 0x4c1   :  { %907 = vadd.xlane.f32.xlu0 %v906_v35  ;;  %v909_v36 = vsel %vm236_vm6, %v2673_v34, 0.0 }
 0x4c2   :  { %910 = vadd.xlane.f32.xlu1 %v909_v36 }
 0x4c3   :  { %v2679_v37 = vpop.eup %2295 }
 0x4c4   :  { %v912_v38 = vsel %vm236_vm6, %v2679_v37, 0.0 }
 0x4c5   :  { %913 = vadd.xlane.f32.xlu0 %v912_v38 }
 0x4d3   :  { %1387 = vrot.lane.b32.xlu1 %v2586_v58, %s2427_s26 }
 0x4d7   :  { %2244 = vrot.lane.b32.xlu1 %v2243_v17, %s2428_s27 }
 0x4db   :  { %1463 = vrot.lane.b32.xlu0 %v2578_v56, %s2427_s26 }
 0x4df   :  { %2249 = vrot.lane.b32.xlu0 %v2248_v53, %s2428_s27 }
 0x4ed   :  { %v896_v44 = vpop.xlane.xlu0 %895 }
 0x4ee   :  { %2297 = vrcp.f32 %v896_v44 }
 0x4f1   :  { %v893_v45 = vpop.xlane.xlu1 %892 }
 0x4f2   :  { %2299 = vrcp.f32 %v893_v45 }
 0x4f8   :  { %v2298_v46 = vpop.eup %2297 }
 0x4f9   :  { %v924_v48 = vmul.f32 %v2298_v46, %v2658_v55 }
 0x4fb   :  { %2113 = vmatmul.mubr.msk.f32.vlgmr.msra.gmra.mrb[12].mxu1 %vm236_vm6, %v924_v48 }
 0x4fc   :  { %v2300_v50 = vpop.eup %2299  ;;  %2121 = vmatpush3.msra.mxu1 %v1160_v41  ;;  %2122 = vmatprep.mubr.msk.f32.mxu1 %vm2425_vm5, %v2423_v51 }
 0x4fd   :  { %v923_v56 = vmul.f32 %v2300_v50, %v2662_v49  ;;  %2130 = vmatprep.subr.mxu1 %v2423_v51 }
 0x4ff   :  { %2108 = vmatmul.mubr.msk.f32.vlgmr.msra.gmra.mrb[6].mxu0 %vm236_vm6, %v923_v56 }
 0x500   :  { %2116 = vmatpush3.msra.mxu0 %v1084_v39  ;;  %2117 = vmatprep.mubr.msk.f32.mxu0 %vm2425_vm5, %v2423_v51 }
 0x501   :  { %2125 = vmatprep.subr.mxu0 %v2423_v51 }
 0x546   :  { %v899_v58 = vpop.xlane.xlu1 %898 }
 0x547   :  { %2301 = vrcp.f32 %v899_v58 }
 0x54a   :  { %v902_v59 = vpop.xlane.xlu0 %901 }
 0x54b   :  { %2303 = vrcp.f32 %v902_v59  ;;  %v905_v60 = vpop.xlane.xlu1 %904 }
 0x54c   :  { %2305 = vrcp.f32 %v905_v60 }
 0x54e   :  { %v908_v61 = vpop.xlane.xlu0 %907 }
 0x54f   :  { %2307 = vrcp.f32 %v908_v61  ;;  %v911_v62 = vpop.xlane.xlu1 %910 }
 0x550   :  { %2309 = vrcp.f32 %v911_v62 }
 0x551   :  { %v2302_v52 = vpop.eup %2301 }
 0x552   :  { %v925_v63 = vmul.f32 %v2302_v52, %v2286_v25  ;;  %v914_v55 = vpop.xlane.xlu0 %913 }
 0x553   :  { %2311 = vrcp.f32 %v914_v55  ;;  %v1388_v2 = vpop.permute.xlu1 %1387 }
 0x554   :  { %2118 = vmatmul.mubr.msk.f32.vlgmr.msra.gmra.mrb[8].mxu0 %vm236_vm6, %v925_v63 }
 0x555   :  { %v2304_v49 = vpop.eup %2303  ;;  %2126 = vmatpush3.msra.mxu0 %v1236_v43  ;;  %2127 = vmatprep.mubr.msk.f32.mxu0 %vm2425_vm5, %v2423_v51 }
 0x556   :  { %v2306_v57 = vpop.eup %2305  ;;  %v926_v54 = vmul.f32 %v2304_v49, %v2288_v29  ;;  %2135 = vmatprep.subr.mxu0 %v2423_v51  ;;  %v1464_v3 = vpop.permute.xlu0 %1463 }
 0x557   :  { %v927_v19 = vmul.f32 %v2306_v57, %v2290_v30  ;;  %v2245_v7 = vpop.permute.xlu1 %2244 }
 0x558   :  { %2123 = vmatmul.mubr.msk.f32.vlgmr.msra.gmra.mrb[14].mxu1 %vm236_vm6, %v926_v54  ;;  %v2247_v8 = vunpack.i.h.bf16 %v2245_v7  ;;  %v2246_v9 = vunpack.i.l.bf16 %v2245_v7 }
 0x559   :  { %v2308_v20 = vpop.eup %2307  ;;  %2128 = vmatmul.mubr.msk.f32.vlgmr.msra.gmra.mrb[10].mxu0 %vm236_vm6, %v927_v19  ;;  %2131 = vmatpush3.msra.mxu1 %v1312_v42 }
 0x55a   :  { %v2310_v15 = vpop.eup %2309  ;;  %v928_v16 = vmul.f32 %v2308_v20, %v2671_v33  ;;  %2136 = vmatpush3.msra.mxu0 %v1388_v2  ;;  %2132 = vmatprep.mubr.msk.f32.mxu1 %vm2425_vm5, %v2423_v51  ;;  %v2250_v10 = vpop.permute.xlu0 %2249  ;;  %v2194_v11 = vpack.c.bf16 %v2247_v8, %v2246_v9  ;;  %v62_v2 = vld [vmem:[#allocation7 + $0x20] sm:$0xff] }
 0x55b   :  { %v929_v17 = vmul.f32 %v2310_v15, %v2673_v34  ;;  %2137 = vmatprep.mubr.msk.f32.mxu0 %vm2425_vm5, %v2423_v51  ;;  %2140 = vmatprep.subr.mxu1 %v2423_v51  ;;  %v2252_v12 = vunpack.i.h.bf16 %v2250_v10  ;;  %v2251_v13 = vunpack.i.l.bf16 %v2250_v10  ;;  %v63_v15 = vld [vmem:[#allocation7 + $0x28] sm:$0xff] }
 0x55c   :  { %2133 = vmatmul.mubr.msk.f32.vlgmr.msra.gmra.mrb[16].mxu1 %vm236_vm6, %v928_v16  ;;  %2195 = vmatprep.subr.bf16.mxu0 %v2194_v11  ;;  %v2202_v16 = vpack.c.bf16 %v63_v15, %v62_v2 }
 0x55d   :  { %v2312_v5 = vpop.eup %2311  ;;  %2138 = vmatmul.mubr.msk.f32.vlgmr.msra.gmra.mrb[12].mxu0 %vm236_vm6, %v929_v17  ;;  %2141 = vmatpush3.msra.mxu1 %v1464_v3  ;;  %v2198_v14 = vpack.c.bf16 %v2252_v12, %v2251_v13 }
 0x55e   :  { %v930_v6 = vmul.f32 %v2312_v5, %v2679_v37  ;;  %2142 = vmatprep.mubr.msk.f32.mxu1 %vm2425_vm5, %v2423_v51  ;;  %2197 = vmatpush3.bf16.msra.mxu0 %v2194_v11 }
 0x55f   :  { %2199 = vmatprep.subr.bf16.mxu0 %v2198_v14  ;;  %2203 = vmatprep.subr.bf16.mxu1 %v2202_v16 }
 0x560   :  { %2143 = vmatmul.mubr.msk.f32.vlgmr.msra.gmra.mrb[18].mxu1 %vm236_vm6, %v930_v6 }
 0x561   :  { %2205 = vmatpush3.bf16.msra.mxu1 %v2202_v16 }
 0x562   :  { %2201 = vmatpush3.bf16.msra.mxu0 %v2198_v14 }
 0x5ce   :  { %v1079_v18 = vpop.f32.mrb[12].mxu1 }
 0x5cf   :  { %v2114_v21 = vpop.f32.mrb[13].mxu1 }
 0x5d2   :  { %v1003_v22 = vpop.f32.mrb[6].mxu0 }
 0x5d3   :  { %v2109_v23 = vpop.f32.mrb[7].mxu0 }
 0x5d4   :  { %v64_v23 = vld [vmem:[#allocation7 + $0x30] sm:$0xff] }
 0x627   :  { %v1155_v24 = vpop.f32.mrb[8].mxu0 }
 0x628   :  { %1541 = vrot.lane.b32.xlu1 %v1155_v24, %s2418_s25  ;;  %v2119_v51 = vpop.f32.mrb[9].mxu0  ;;  %v65_v24 = vld [vmem:[#allocation7 + $0x38] sm:$0xff] }
 0x62b   :  { %v1231_v25 = vpop.f32.mrb[14].mxu1 }
 0x62c   :  { %v1307_v26 = vpop.f32.mrb[10].mxu0  ;;  %1543 = vrot.lane.b32.xlu0 %v1231_v25, %s2418_s25  ;;  %v2124_v27 = vpop.f32.mrb[15].mxu1  ;;  %v2206_v25 = vpack.c.bf16 %v65_v24, %v64_v23 }
 0x62d   :  { %1549 = vrot.lane.b32.xlu1 %v1307_v26, %s2429_s28  ;;  %v2129_v28 = vpop.f32.mrb[11].mxu0  ;;  %v2253_v27 = vpack.i.bf16 %v63_v15, %v62_v2 }
 0x62e   :  { %2207 = vmatprep.subr.bf16.mxu1 %v2206_v25  ;;  %v66_v28 = vld [vmem:[#allocation7 + $0x40] sm:$0xff] }
 0x62f   :  { %v1383_v29 = vpop.f32.mrb[16].mxu1  ;;  %2209 = vmatpush3.bf16.msra.mxu1 %v2206_v25 }
 0x630   :  { %v1459_v30 = vpop.f32.mrb[12].mxu0  ;;  %1551 = vrot.lane.b32.xlu0 %v1383_v29, %s2429_s28  ;;  %v2134_v31 = vpop.f32.mrb[17].mxu1  ;;  %v67_v29 = vld [vmem:[#allocation7 + $0x48] sm:$0xff] }
 0x631   :  { %1557 = vrot.lane.b32.xlu1 %v1459_v30, %s2430_s29  ;;  %v2139_v32 = vpop.f32.mrb[13].mxu0  ;;  %v2263_v30 = vpack.i.bf16 %v67_v29, %v66_v28 }
 0x633   :  { %v1535_v33 = vpop.f32.mrb[18].mxu1 }
 0x634   :  { %1559 = vrot.lane.b32.xlu0 %v1535_v33, %s2430_s29  ;;  %v2144_v34 = vpop.f32.mrb[19].mxu1 }
 0x635   :  { %1588 = vrot.lane.b32.xlu1 %v2542_v47, %s2428_s27 }
 0x69a   :  { %v1542_v35 = vpop.permute.xlu1 %1541 }
 0x69b   :  { %v1563_v38 = vsel %vm236_vm6, %v1003_v22, %v1542_v35 }
 0x69e   :  { %v1544_v36 = vpop.permute.xlu0 %1543 }
 0x69f   :  { %v1550_v37 = vpop.permute.xlu1 %1549  ;;  %v1564_v44 = vsel %vm236_vm6, %v1079_v18, %v1544_v36 }
 0x6a0   :  { %v1566_v41 = vsel %vm1565_vm9, %v1563_v38, %v1550_v37 }
 0x6a2   :  { %v1552_v39 = vpop.permute.xlu0 %1551 }
 0x6a3   :  { %v1558_v42 = vpop.permute.xlu1 %1557  ;;  %v1567_v45 = vsel %vm1565_vm9, %v1564_v44, %v1552_v39 }
 0x6a4   :  { %v1569_v43 = vsel %vm1568_vm10, %v1566_v41, %v1558_v42  ;;  %v2258_v41 = vpack.i.bf16 %v65_v24, %v64_v23  ;;  %v68_v42 = vld [vmem:[#allocation7 + $0x50] sm:$0xff] }
 0x6a5   :  { %2153 = vmatprep.mubr.msk.f32.mxu0 %vm73_vm0, %v1569_v43  ;;  %v69_v43 = vld [vmem:[#allocation7 + $0x58] sm:$0xff] }
 0x6a6   :  { %v1560_v46 = vpop.permute.xlu0 %1559  ;;  %v2268_v44 = vpack.i.bf16 %v69_v43, %v68_v42 }
 0x6a7   :  { %v1570_v48 = vsel %vm1568_vm10, %v1567_v45, %v1560_v46  ;;  %v1589_v47 = vpop.permute.xlu1 %1588 }
 0x6a8   :  { %2154 = vmatmul.mubr.msk.f32.vlgmr.msra.gmra.mrb[14].mxu0 %vm73_vm0, %v1570_v48 }
 0x77b   :  { %v2155_v50 = vpop.f32.mrb[14].mxu0 }
 0x77c   :  { %v1669_v56 = vadd.f32 %v2155_v50, %v1589_v47  ;;  %v1663_v58 = vpop.f32.mrb[15].mxu0 }
 0x77d   :  { %v1664_v59 = vadd.f32 %v1663_v58, %v1589_v47 }
 0x77e   :  { %v2732_v60 = vadd.f32 %v1669_v56, %v2506_v1 }
 0x77f   :  { %v2735_v61 = vadd.f32 %v1664_v59, %v2504_v0 }
 0x780   :  { %v1677_v62 = vsel %vm73_vm0, %v2732_v60, 0.0 }
 0x781   :  { %1678 = vadd.xlane.f32.xlu1 %v1677_v62  ;;  %v1674_v52 = vsel %vm73_vm0, %v2735_v61, 0.0 }
 0x782   :  { %1675 = vadd.xlane.f32.xlu0 %v1674_v52 }
 0x80e   :  { %v1679_v63 = vpop.xlane.xlu1 %1678 }
 0x80f   :  { %v1681_v55 = vmul.f32 0.03125, %v1679_v63  ;;  %v1676_v53 = vpop.xlane.xlu0 %1675 }
 0x810   :  { %v1680_v49 = vmul.f32 0.03125, %v1676_v53 }
 0x811   :  { %v1683_v57 = vsub.f32 %v2732_v60, %v1681_v55 }
 0x812   :  { %v1682_v1 = vsub.f32 %v2735_v61, %v1680_v49 }
 0x813   :  { %1718 = vrot.lane.b32.xlu1 %v1683_v57, %s2427_s26  ;;  %v1685_v19 = vmul.f32 %v1683_v57, %v1683_v57 }
 0x814   :  { %v1684_v0 = vmul.f32 %v1682_v1, %v1682_v1 }
 0x815   :  { %v1689_v20 = vsel %vm73_vm0, %v1685_v19, 0.0 }
 0x816   :  { %v1686_v54 = vsel %vm73_vm0, %v1684_v0, 0.0  ;;  %v1989_v0 = vld [vmem:[#allocation7 + $0x61] ss:$0 sm:$0xff] }
 0x817   :  { %1687 = vadd.xlane.f32.xlu0 %v1686_v54 }
 0x81b   :  { %1690 = vadd.xlane.f32.xlu0 %v1689_v20 }
 0x831   :  { %1716 = vrot.lane.b32.xlu0 %v1682_v1, %s2427_s26 }
 0x835   :  { %2254 = vrot.lane.b32.xlu0 %v2253_v27, %s2427_s26 }
 0x839   :  { %2264 = vrot.lane.b32.xlu0 %v2263_v30, %s2427_s26 }
 0x83d   :  { %1852 = vrot.lane.b32.xlu0 %v1989_v0, %s2427_s26 }
 0x885   :  { %v1719_v33 = vpop.permute.xlu1 %1718 }
 0x886   :  { %v1723_v35 = vmul.f32 %v2512_v4, %v1719_v33 }
 0x8a4   :  { %v1688_v17 = vpop.xlane.xlu0 %1687 }
 0x8a5   :  { %v1692_v3 = vmul.f32 0.032258064, %v1688_v17 }
 0x8a7   :  { %2313 = vrsqrt.f32 %v1692_v3  ;;  %vm1696_vm11 = vcmp.eq.f32.partialorder %v1692_v3, inf  ;;  %v1699_v9 = vand.u32 2147483648, %v1692_v3  ;;  %vm1698_vm12 = vcmp.eq.f32.partialorder %v1692_v3, 0.0 }
 0x8a8   :  { %v1691_v5 = vpop.xlane.xlu0 %1690 }
 0x8a9   :  { %v1693_v6 = vmul.f32 0.032258064, %v1691_v5 }
 0x8ab   :  { %2315 = vrsqrt.f32 %v1693_v6  ;;  %vm1703_vm13 = vcmp.eq.f32.partialorder %v1693_v6, inf  ;;  %v1706_v18 = vand.u32 2147483648, %v1693_v6  ;;  %vm1705_vm14 = vcmp.eq.f32.partialorder %v1693_v6, 0.0 }
 0x8ac   :  { %v1717_v26 = vpop.permute.xlu0 %1716 }
 0x8ad   :  { %v1722_v31 = vmul.f32 %v2512_v4, %v1717_v26 }
 0x8b0   :  { %v2255_v45 = vpop.permute.xlu0 %2254 }
 0x8b1   :  { %v2314_v7 = vpop.eup %2313  ;;  %v2257_v4 = vunpack.i.h.bf16 %v2255_v45  ;;  %v2256_v46 = vunpack.i.l.bf16 %v2255_v45 }
 0x8b2   :  { %v1695_v8 = vmul.f32 %v2314_v7, %v1692_v3 }
 0x8b3   :  { %v2210_v48 = vpack.c.bf16 %v2257_v4, %v2256_v46 }
 0x8b4   :  { %v1697_v10 = vsel %vm1696_vm11, %v1692_v3, %v1695_v8  ;;  %v2265_v50 = vpop.permute.xlu0 %2264 }
 0x8b5   :  { %v2316_v11 = vpop.eup %2315  ;;  %v1700_v12 = vsel %vm1698_vm12, %v1699_v9, %v1697_v10  ;;  %2211 = vmatprep.subr.bf16.mxu0 %v2210_v48  ;;  %v2267_v56 = vunpack.i.h.bf16 %v2265_v50  ;;  %v2266_v58 = vunpack.i.l.bf16 %v2265_v50 }
 0x8b6   :  { %v1702_v13 = vmul.f32 %v2316_v11, %v1693_v6  ;;  %v1708_v14 = vadd.f32 1e-06, %v1700_v12  ;;  %2213 = vmatpush3.bf16.msra.mxu0 %v2210_v48 }
 0x8b7   :  { %v2218_v55 = vpack.c.bf16 %v2267_v56, %v2266_v58 }
 0x8b8   :  { %v1704_v21 = vsel %vm1703_vm13, %v1693_v6, %v1702_v13  ;;  %2317 = vrcp.f32 %v1708_v14  ;;  %v1853_v17 = vpop.permute.xlu0 %1852 }
 0x8b9   :  { %v1707_v22 = vsel %vm1705_vm14, %v1706_v18, %v1704_v21 }
 0x8ba   :  { %v1709_v51 = vadd.f32 1e-06, %v1707_v22 }
 0x8bc   :  { %2319 = vrcp.f32 %v1709_v51 }
 0x8c2   :  { %v2318_v32 = vpop.eup %2317 }
 0x8c3   :  { %v1724_v34 = vmul.f32 %v2318_v32, %v1722_v31 }
 0x8c5   :  { %v1726_v36 = vadd.f32 %v1724_v34, %v2535_v40 }
 0x8c6   :  { %v2320_v37 = vpop.eup %2319 }
 0x8c7   :  { %1734 = vrot.lane.b32.xlu1 %v1726_v36, %s2427_s26  ;;  %v1725_v38 = vmul.f32 %v2320_v37, %v1723_v35 }
 0x8c9   :  { %v1727_v39 = vadd.f32 %v1725_v38, %v2535_v40 }
 0x8cb   :  { %1736 = vrot.lane.b32.xlu1 %v1727_v39, %s2427_s26 }
 0x8cf   :  { %2259 = vrot.lane.b32.xlu1 %v2258_v41, %s2427_s26 }
 0x8d3   :  { %2269 = vrot.lane.b32.xlu1 %v2268_v44, %s2427_s26 }
 0x939   :  { %v1735_v47 = vpop.permute.xlu1 %1734 }
 0x93a   :  { %2164 = vmatprep.mubr.msk.f32.mxu1 %vm73_vm0, %v1735_v47 }
 0x93d   :  { %v1737_v40 = vpop.permute.xlu1 %1736 }
 0x93e   :  { %2165 = vmatmul.mubr.msk.f32.vlgmr.msra.gmra.mrb[20].mxu1 %vm73_vm0, %v1737_v40 }
 0x941   :  { %v2260_v59 = vpop.permute.xlu1 %2259 }
 0x942   :  { %v2262_v62 = vunpack.i.h.bf16 %v2260_v59  ;;  %v2261_v52 = vunpack.i.l.bf16 %v2260_v59 }
 0x944   :  { %v2214_v63 = vpack.c.bf16 %v2262_v62, %v2261_v52 }
 0x945   :  { %v2270_v53 = vpop.permute.xlu1 %2269 }
 0x946   :  { %2215 = vmatprep.subr.bf16.mxu0 %v2214_v63  ;;  %v2272_v49 = vunpack.i.h.bf16 %v2270_v53  ;;  %v2271_v57 = vunpack.i.l.bf16 %v2270_v53 }
 0x947   :  { %2217 = vmatpush3.bf16.msra.mxu0 %v2214_v63 }
 0x948   :  { %v2222_v1 = vpack.c.bf16 %v2272_v49, %v2271_v57  ;;  %2219 = vmatprep.subr.bf16.mxu0 %v2218_v55 }
 0x94b   :  { %2221 = vmatpush3.bf16.msra.mxu0 %v2218_v55 }
 0x94c   :  { %2223 = vmatprep.subr.bf16.mxu0 %v2222_v1 }
 0x94f   :  { %2225 = vmatpush3.bf16.msra.mxu0 %v2222_v1 }
 0xa11   :  { %v2166_v54 = vpop.f32.mrb[20].mxu1 }
 0xa12   :  { %v1814_v19 = vadd.f32 %v2166_v54, %v1989_v0  ;;  %v1808_v20 = vpop.f32.mrb[21].mxu1 }
 0xa13   :  { %v1809_v2 = vadd.f32 %v1989_v0, %v1808_v20 }
 0xa14   :  { %v1818_v16 = vmax.f32 %v1814_v19, 0.0 }
 0xa15   :  { %v1817_v15 = vmax.f32 %v1809_v2, 0.0 }
 0xa17   :  { %2183 = vmatprep.mubr.msk.f32.mxu0 %vm1855_vm15, %v1817_v15 }
 0xa18   :  { %2184 = vmatmul.mubr.msk.f32.vlgmr.msra.gmra.mrb[16].mxu0 %vm1855_vm15, %v1818_v16 }
 0xaeb   :  { %v2185_v3 = vpop.f32.mrb[16].mxu0 }
 0xaec   :  { %v1934_v5 = vadd.f32 %v2185_v3, %v1853_v17  ;;  %v1928_v6 = vpop.f32.mrb[17].mxu0 }
 0xaed   :  { %v1929_v7 = vadd.f32 %v1928_v6, %v1853_v17 }
 0xaee   :  { %v1938_v8 = vadd.f32 %v1934_v5, %v2732_v60 }
 0xaef   :  { %v1937_v9 = vadd.f32 %v1929_v7, %v2735_v61 }
 0xaf0   :  { %1940 = vst.msk [vmem:[#allocation8 + $0x8] sm:$0xff] %vm73_vm0, %v1938_v8 }
 0xaf1   :  { %1939 = vst.msk [vmem:[#allocation8] sm:$0xff] %vm73_vm0, %v1937_v9 }
 0xaf2   :  { %2398 = shalt.err (!%p2395_p0)
}
 0xaf3   :  { %s2399_s8 = scalar_lea.hbm %s2782_s3, 256 }
 0xaf4   :  { %p2400_p1 = scmp.ne.s32.totalorder %s2782_s3, %s2399_s8  ;;  %p2403_p2 = scmp.lt.u32.totalorder %s2399_s8, %s2782_s3 }
 0xaf6   :  { %p2405_p3 = pnand %p2403_p2, %p2400_p1 }
 0xaf8   :  { %2408 = shalt.err (!%p2405_p3)
}
 0xaf9   :  { %1952 = dma.vmem_to_hbm [thread:$0]  %s1947_s4, 256, %s2782_s3, [#allocation4], %s2417_s24, %s2417_s24, %s2418_s25  }
 0xafa   :  { %2413 = dma.done.wait [#allocation4], 256  }
 0xafb   :  { %2414 = vsyncadd [#allocation4], 4294967040 }
 0xafc   :  { %1956 = vsyncpa [#allocation3], 1 }
 0xafd   :  { %1957 = vsyncpa [#allocation6], 1 }
 0xafe   :  { %1958 = vsyncpa [#allocation4], 1 }

</bundles_post_ra>
